<compile_context>
chip_gen: v7x
topology: tpu7x:2x2x1
jax: 0.10.0
libtpu: 0.0.40
codegen_flags: <defaults>
</compile_context>

<pallas_src>
import jax
import jax.numpy as jnp
from jax import lax
from jax.experimental import pallas as pl
from jax.experimental.pallas import tpu as pltpu

NUM_BITS = 32
D_HIDDEN = 32
PACK = 4                              # tokens packed per 128-lane row
LANES_IN = PACK * NUM_BITS            # 128  (bit lanes)
LANES_OUT = PACK * D_HIDDEN           # 128  (output lanes)
_LOG2_BITS = NUM_BITS.bit_length() - 1  # 5
TILE_R = 2048                         # packed rows per grid step (= 8192 tokens)


def _round_up(a, b):
    return (a + b - 1) // b * b


def _num_encoder_kernel(x_ref, w_ref, o_ref):
    # x_ref: (tile_r, PACK)      int32  -- PACK consecutive tokens per row
    # w_ref: (LANES_IN, LANES_OUT) f32  -- blockdiag(W^T x PACK), resident across steps
    # o_ref: (tile_r, LANES_OUT)  f32   -- PACK tokens' outputs per row, lane-dense
    tile_r = o_ref.shape[0]

    lane = lax.broadcasted_iota(jnp.int32, (tile_r, LANES_IN), 1)      # 0..127
    grp = lane >> _LOG2_BITS                                           # token slot 0..PACK-1
    shift = (NUM_BITS - 1) - (lane & (NUM_BITS - 1))                   # MSB-first bit shift

    # Scatter each packed token's int32 into its own 32-lane group (keeps everything
    # lane-dense; the broadcast/select chain rides the VPU/XLU while MXU + stores idle).
    xg = jnp.zeros((tile_r, LANES_IN), jnp.int32)
    for p in range(PACK):
        col = jnp.broadcast_to(x_ref[:, p:p + 1], (tile_r, LANES_IN))
        xg = jnp.where(grp == p, col, xg)

    bits = jnp.bitwise_and(jnp.right_shift(xg, shift), 1).astype(jnp.float32)

    # (tile_r, 128) @ (128, 128) block-diagonal W^T -> (tile_r, 128), lane-dense store.
    o_ref[...] = jnp.dot(bits, w_ref[...], preferred_element_type=jnp.float32)


def num_encoder(x_int, w):
    """x_int: integer array of any shape (uint semantics); w: (D_hidden, num_bits) weight.
    Returns float32 array of shape x_int.shape + (D_hidden,)."""
    orig_shape = x_int.shape
    x_flat = jnp.ravel(x_int)
    if x_flat.dtype == jnp.uint32:
        x_flat = lax.bitcast_convert_type(x_flat, jnp.int32)   # keep exact bit pattern
    else:
        x_flat = x_flat.astype(jnp.int32)
    n = x_flat.shape[0]

    # Pad so every (tile_r, PACK) block is full (bulletproof remainder handling).
    r_needed = max(1, -(-n // PACK))
    tile_r = min(TILE_R, _round_up(r_needed, 8))
    r_total = _round_up(r_needed, tile_r)
    n_pad = r_total * PACK
    if n_pad != n:
        x_flat = jnp.pad(x_flat, (0, n_pad - n))
    x2d = x_flat.reshape(r_total, PACK)

    # Block-diagonal weight: w_bd[p*32 + j, p*32 + d] = W^T[j, d].
    w_t = jnp.asarray(w, jnp.float32).T                              # (NUM_BITS, D_HIDDEN)
    w_bd = jnp.kron(jnp.eye(PACK, dtype=jnp.float32), w_t)           # (128, 128)

    grid = (r_total // tile_r,)
    out = pl.pallas_call(
        _num_encoder_kernel,
        out_shape=jax.ShapeDtypeStruct((r_total, LANES_OUT), jnp.float32),
        grid=grid,
        in_specs=[
            pl.BlockSpec((tile_r, PACK), lambda i: (i, 0)),
            pl.BlockSpec((LANES_IN, LANES_OUT), lambda i: (0, 0)),   # resident weight
        ],
        out_specs=pl.BlockSpec((tile_r, LANES_OUT), lambda i: (i, 0)),
        compiler_params=pltpu.CompilerParams(
            dimension_semantics=("parallel",),
            vmem_limit_bytes=32 * 1024 * 1024,
        ),
        cost_estimate=pl.CostEstimate(
            flops=2 * n_pad * NUM_BITS * D_HIDDEN,
            transcendentals=0,
            bytes_accessed=n_pad * 4 + n_pad * D_HIDDEN * 4,
        ),
    )(x2d, w_bd)

    # (r_total, PACK*D) is contiguously identical to (n_pad, D).
    out = out.reshape(n_pad, D_HIDDEN)
    if n_pad != n:
        out = out[:n]
    return out.reshape(orig_shape + (D_HIDDEN,))


def reference_num_encoder(x_int, w):
    """Pure-JAX reference matching the PyTorch semantics (uint path, MSB first)."""
    shifts = jnp.arange(NUM_BITS - 1, -1, -1, dtype=jnp.int32)
    bits = jnp.bitwise_and(
        jnp.right_shift(x_int[..., None].astype(jnp.int32), shifts), 1
    ).astype(jnp.float32)
    return jnp.dot(bits, jnp.asarray(w, jnp.float32).T,
                   precision=lax.Precision.HIGHEST)


if __name__ == "__main__":
    key = jax.random.PRNGKey(0)
    k_w, k_x = jax.random.split(key)

    # Deterministic Linear weight init (PyTorch-like uniform(-1/sqrt(fan_in), 1/sqrt(fan_in)))
    bound = 1.0 / (NUM_BITS ** 0.5)
    w = jax.random.uniform(k_w, (D_HIDDEN, NUM_BITS), jnp.float32,
                           minval=-bound, maxval=bound)

    # Small unsigned-integer input: batch=2, seq=8
    x = jax.random.randint(k_x, (2, 8), 0, 2**31 - 1, dtype=jnp.int32)

    out = num_encoder(x, w)
    jax.block_until_ready(out)

    ref = reference_num_encoder(x, w)
    assert out.shape == (2, 8, D_HIDDEN)
    assert jnp.allclose(out, ref, atol=1e-4, rtol=1e-5), float(jnp.max(jnp.abs(out - ref)))

    print("KERNEL_OK")
</pallas_src>

<mosaic_0001>
module attributes {stable_mosaic.version = 11 : i64} {
  func.func @_num_encoder_kernel(%arg0: i32, %arg1: memref<8x4xi32, #tpu.memory_space<vmem>>, %arg2: memref<128x128xf32, #tpu.memory_space<vmem>>, %arg3: memref<8x128xf32, #tpu.memory_space<vmem>>) attributes {dimension_semantics = [#tpu.dimension_semantics<parallel>], iteration_bounds = array<i64: 1>, scalar_prefetch = 0 : i64, scratch_operands = 0 : i64, tpu.core_type = #tpu.core_type<tc>, window_params = [{transform_indices = @transform_0, window_bounds = array<i64: 8, 4>}, {pipeline_mode = #tpu.pipeline_mode<synchronous>, transform_indices = @transform_1, window_bounds = array<i64: 128, 128>}, {transform_indices = @transform_2, window_bounds = array<i64: 8, 128>}]} {
    %0 = tpu.iota {dimensions = array<i32: 1>} : vector<8x128xi32>
    %c5_i32 = arith.constant 5 : i32
    %1 = vector.broadcast %c5_i32 : i32 to vector<8x128xi32>
    %2 = arith.shrsi %0, %1 : vector<8x128xi32>
    %c31_i32 = arith.constant 31 : i32
    %3 = vector.broadcast %c31_i32 : i32 to vector<8x128xi32>
    %4 = arith.andi %0, %3 : vector<8x128xi32>
    %c31_i32_0 = arith.constant 31 : i32
    %5 = vector.broadcast %c31_i32_0 : i32 to vector<8x128xi32>
    %6 = arith.subi %5, %4 : vector<8x128xi32>
    %c0_i32 = arith.constant 0 : i32
    %7 = vector.broadcast %c0_i32 : i32 to vector<8x128xi32>
    %c0 = arith.constant 0 : index
    %c0_1 = arith.constant 0 : index
    %8 = vector.load %arg1[%c0, %c0_1] : memref<8x4xi32, #tpu.memory_space<vmem>>, vector<8x1xi32>
    %9 = vector.shape_cast %8 : vector<8x1xi32> to vector<8x1xi32>
    %10 = vector.broadcast %9 : vector<8x1xi32> to vector<8x128xi32>
    %c0_i32_2 = arith.constant 0 : i32
    %11 = vector.broadcast %c0_i32_2 : i32 to vector<8x128xi32>
    %12 = arith.cmpi eq, %2, %11 : vector<8x128xi32>
    %13 = arith.select %12, %10, %7 : vector<8x128xi1>, vector<8x128xi32>
    %c0_3 = arith.constant 0 : index
    %c1 = arith.constant 1 : index
    %14 = vector.load %arg1[%c0_3, %c1] : memref<8x4xi32, #tpu.memory_space<vmem>>, vector<8x1xi32>
    %15 = vector.shape_cast %14 : vector<8x1xi32> to vector<8x1xi32>
    %16 = vector.broadcast %15 : vector<8x1xi32> to vector<8x128xi32>
    %c1_i32 = arith.constant 1 : i32
    %17 = vector.broadcast %c1_i32 : i32 to vector<8x128xi32>
    %18 = arith.cmpi eq, %2, %17 : vector<8x128xi32>
    %19 = arith.select %18, %16, %13 : vector<8x128xi1>, vector<8x128xi32>
    %c0_4 = arith.constant 0 : index
    %c2 = arith.constant 2 : index
    %20 = vector.load %arg1[%c0_4, %c2] : memref<8x4xi32, #tpu.memory_space<vmem>>, vector<8x1xi32>
    %21 = vector.shape_cast %20 : vector<8x1xi32> to vector<8x1xi32>
    %22 = vector.broadcast %21 : vector<8x1xi32> to vector<8x128xi32>
    %c2_i32 = arith.constant 2 : i32
    %23 = vector.broadcast %c2_i32 : i32 to vector<8x128xi32>
    %24 = arith.cmpi eq, %2, %23 : vector<8x128xi32>
    %25 = arith.select %24, %22, %19 : vector<8x128xi1>, vector<8x128xi32>
    %c0_5 = arith.constant 0 : index
    %c3 = arith.constant 3 : index
    %26 = vector.load %arg1[%c0_5, %c3] : memref<8x4xi32, #tpu.memory_space<vmem>>, vector<8x1xi32>
    %27 = vector.shape_cast %26 : vector<8x1xi32> to vector<8x1xi32>
    %28 = vector.broadcast %27 : vector<8x1xi32> to vector<8x128xi32>
    %c3_i32 = arith.constant 3 : i32
    %29 = vector.broadcast %c3_i32 : i32 to vector<8x128xi32>
    %30 = arith.cmpi eq, %2, %29 : vector<8x128xi32>
    %31 = arith.select %30, %28, %25 : vector<8x128xi1>, vector<8x128xi32>
    %32 = arith.shrsi %31, %6 : vector<8x128xi32>
    %c1_i32_6 = arith.constant 1 : i32
    %33 = vector.broadcast %c1_i32_6 : i32 to vector<8x128xi32>
    %34 = arith.andi %32, %33 : vector<8x128xi32>
    %35 = arith.sitofp %34 : vector<8x128xi32> to vector<8x128xf32>
    %c0_7 = arith.constant 0 : index
    %c0_8 = arith.constant 0 : index
    %36 = vector.load %arg2[%c0_7, %c0_8] : memref<128x128xf32, #tpu.memory_space<vmem>>, vector<128x128xf32>
    %cst = arith.constant dense<0.000000e+00> : vector<8x128xf32>
    %37 = tpu.matmul %35, %36, %cst {dimension_numbers = #tpu.dot_dimension_numbers<[1], [0], [0], [1], [0, 0, 1, 1], [], []>} : vector<8x128xf32>, vector<128x128xf32>, vector<8x128xf32> -> vector<8x128xf32>
    %c0_9 = arith.constant 0 : index
    %c0_10 = arith.constant 0 : index
    %38 = vector.load %arg3[%c0_9, %c0_10] : memref<8x128xf32, #tpu.memory_space<vmem>>, vector<8x128xf32>
    tpu.vector_store %arg3[%c0_9, %c0_10], %37 {strides = array<i32>} : memref<8x128xf32, #tpu.memory_space<vmem>>, vector<8x128xf32>,
    return
  }
  func.func @transform_0(%arg0: i32) -> (i32, i32) {
    %c0_i32 = arith.constant 0 : i32
    %c0_i32_0 = arith.constant 0 : i32
    return %arg0, %c0_i32 : i32, i32
  }
  func.func @transform_1(%arg0: i32) -> (i32, i32) {
    %c0_i32 = arith.constant 0 : i32
    %c0_i32_0 = arith.constant 0 : i32
    %c0_i32_1 = arith.constant 0 : i32
    return %c0_i32, %c0_i32_0 : i32, i32
  }
  func.func @transform_2(%arg0: i32) -> (i32, i32) {
    %c0_i32 = arith.constant 0 : i32
    %c0_i32_0 = arith.constant 0 : i32
    return %arg0, %c0_i32 : i32, i32
  }
}

</mosaic_0001>

<bundles_post_ra>
// kernel: tpu_custom_call.1
= control target key start
LH: loop header
LB: loop body
LE: loop exit
PB: predicated region body
PF: predicated region fallthrough
CT: control target
= control target key end

     0   :  { %7 = vsyncpa [#allocation3], 0  ;;  %s350_s0 = inlined_call_operand.vmem [shape: s32[8,4], index: 0, kind: input, shape index: {}]   ;;  %s351_s1 = inlined_call_operand.hbm [shape: f32[128,128], index: 1, kind: input, shape index: {}]   ;;  %s352_s2 = inlined_call_operand.hbm [shape: f32[8,128], index: 2, kind: output, shape index: {}]  }
   0x1   :  { %8 = vsyncpa [#allocation4], 0  ;;  %s297_s9 = smov [#allocation2]   ;;  %s249_s13 = scalar_lea.hbm %s351_s1, 2048 }
   0x2   :  { %s16_s10 = sshll.u32 %s297_s9, 4  ;;  %p250_p0 = scmp.ne.s32.totalorder %s351_s1, %s249_s13  ;;  %s17_s10 = int_to_ptr.vmem [resolvable:$true] %s16_s10 }
   0x3   :  { %p253_p1 = scmp.lt.u32.totalorder %s249_s13, %s351_s1 }
   0x5   :  { %p255_p2 = pnand %p253_p1, %p250_p0 }
   0x7   :  { %258 = shalt.err (!%p255_p2)
}
   0x8   :  { %s259_s18 = scalar_lea.vmem %s17_s10, 2048  ;;  %p264_p4 = scmp.lt.s32.totalorder %s17_s10, %s17_s10 }
   0x9   :  { %p260_p3 = scmp.ne.s32.totalorder %s17_s10, %s259_s18  ;;  %p265_p5 = scmp.lt.s32.totalorder %s259_s18, %s259_s18 }
   0xb   :  { %p266_p6 = por %p265_p5, %p264_p4 }
   0xd   :  { %p267_p7 = pnand %p266_p6, %p260_p3 }
   0xf   :  { %270 = shalt.err (!%p267_p7)
}
  0x10   :  { %s298_s19 = smov 128   ;;  %s299_s20 = smov 8  }
  0x11   :  { %22 = dma.hbm_to_vmem [thread:$0]  %s351_s1, 2048, %s17_s10, [#allocation3], %s298_s19, %s298_s19, %s299_s20  }
  0x12   :  { %293 = dma.done.wait [#allocation3], 2048  }
  0x13   :  { %294 = vsyncadd [#allocation3], 4294965248  ;;  %v300_v0 = vmov 0   ;;  %v301_v1 = vmov 2   ;;  %v302_v2 = vmov 0.0|0.0   ;;  %v31_v3 = vld [vmem:[%s350_s0] sm:$0xff]  ;;  %v26_v31 = vlaneseq }
  0x14   :  { %244 = vset.pattern.permute.xlu0 %v300_v0  ;;  %246 = vset.pattern.permute.xlu1 %v301_v1  ;;  %v55_v4 = vld [vmem:[#allocation2] sm:$0xff]  ;;  %v56_v5 = vld [vmem:[#allocation2 + $0x8] sm:$0xff]  ;;  %v57_v7 = vld [vmem:[#allocation2 + $0x10] sm:$0xff]  ;;  %v303_v12 = vmov 1   ;;  %v304_v13 = vmov 3   ;;  %vm305_vm0 = vmmov 0  }
  0x15   :  { %209 = vmatprep.subr.bf16.mxu0 %v302_v2  ;;  %33 = vperm.xlu0 %244, %v31_v3   ;;  %v210_v6 = vpack.c.bf16 %v56_v5, %v55_v4  ;;  %v58_v8 = vld [vmem:[#allocation2 + $0x18] sm:$0xff]  ;;  %v59_v10 = vld [vmem:[#allocation2 + $0x20] sm:$0xff]  ;;  %v60_v11 = vld [vmem:[#allocation2 + $0x28] sm:$0xff]  ;;  %v306_v20 = vmov 0.0   ;;  %v27_v32 = vand.u32 127, %v26_v31  ;;  %s307_s0 = smov [#allocation5]  }
  0x16   :  { %43 = vperm.xlu1 %246, %v31_v3   ;;  %v213_v9 = vpack.c.bf16 %v58_v8, %v57_v7  ;;  %v216_v14 = vpack.c.bf16 %v60_v11, %v59_v10  ;;  %v61_v15 = vld [vmem:[#allocation2 + $0x30] sm:$0xff]  ;;  %v62_v16 = vld [vmem:[#allocation2 + $0x38] sm:$0xff]  ;;  %v63_v18 = vld [vmem:[#allocation2 + $0x40] sm:$0xff]  ;;  %206 = vmatprep.mubr.msk.f32.mxu0 %vm305_vm0, %v306_v20  ;;  %s148_s1 = sshll.u32 %s307_s0, 4  ;;  %s149_s1 = int_to_ptr.vmem [resolvable:$true] %s148_s1 }
  0x17   :  { %211 = vmatpush3.bf16.msra.mxu0 %v210_v6  ;;  %v219_v17 = vpack.c.bf16 %v62_v16, %v61_v15  ;;  %v64_v19 = vld [vmem:[#allocation2 + $0x48] sm:$0xff]  ;;  %v65_v22 = vld [vmem:[#allocation2 + $0x50] sm:$0xff]  ;;  %v66_v23 = vld [vmem:[#allocation2 + $0x58] sm:$0xff]  ;;  %v28_v33 = vshra.s32 %v27_v32, 5  ;;  %v29_v36 = vand.u32 31, %v27_v32  ;;  %s271_s25 = scalar_lea.vmem %s149_s1, 128  ;;  %p276_p9 = scmp.lt.s32.totalorder %s149_s1, %s149_s1 }
  0x18   :  { %212 = vmatprep.subr.bf16.mxu0 %v302_v2  ;;  %v222_v21 = vpack.c.bf16 %v64_v19, %v63_v18  ;;  %v225_v24 = vpack.c.bf16 %v66_v23, %v65_v22  ;;  %v67_v25 = vld [vmem:[#allocation2 + $0x60] sm:$0xff]  ;;  %v68_v26 = vld [vmem:[#allocation2 + $0x68] sm:$0xff]  ;;  %v69_v28 = vld [vmem:[#allocation2 + $0x70] sm:$0xff]  ;;  %p272_p8 = scmp.ne.s32.totalorder %s149_s1, %s271_s25  ;;  %p277_p10 = scmp.lt.s32.totalorder %s271_s25, %s271_s25 }
  0x19   :  { %245 = vset.pattern.permute.xlu0 %v303_v12  ;;  %v228_v27 = vpack.c.bf16 %v68_v26, %v67_v25  ;;  %v70_v29 = vld [vmem:[#allocation2 + $0x78] sm:$0xff]  ;;  %vm35_vm1 = vcmp.eq.s32.totalorder %v28_v33, 0  ;;  %vm40_vm2 = vcmp.eq.s32.totalorder %v28_v33, 1  ;;  %vm45_vm3 = vcmp.eq.s32.totalorder %v28_v33, 2 }
  0x1a   :  { %247 = vset.pattern.permute.xlu1 %v304_v13  ;;  %38 = vperm.xlu0 %245, %v31_v3   ;;  %v231_v30 = vpack.c.bf16 %v70_v29, %v69_v28  ;;  %v30_v39 = vsub.s32 31, %v29_v36  ;;  %vm50_vm4 = vcmp.eq.s32.totalorder %v28_v33, 3  ;;  %p278_p11 = por %p277_p10, %p276_p9 }
  0x1b   :  { %48 = vperm.xlu1 %247, %v31_v3   ;;  %214 = vmatpush3.bf16.msra.mxu0 %v213_v9 }
  0x1c   :  { %215 = vmatprep.subr.bf16.mxu0 %v302_v2  ;;  %p279_p12 = pnand %p278_p11, %p272_p8 }
  0x1e   :  { %248 = vset.pattern.permute.xlu0 %v304_v13 }
  0x1f   :  { %217 = vmatpush3.bf16.msra.mxu0 %v216_v14 }
  0x20   :  { %218 = vmatprep.subr.bf16.mxu0 %v302_v2 }
  0x23   :  { %220 = vmatpush3.bf16.msra.mxu0 %v219_v17 }
  0x24   :  { %221 = vmatprep.subr.bf16.mxu0 %v302_v2 }
  0x27   :  { %223 = vmatpush3.bf16.msra.mxu0 %v222_v21 }
  0x28   :  { %224 = vmatprep.subr.bf16.mxu0 %v302_v2 }
  0x2b   :  { %226 = vmatpush3.bf16.msra.mxu0 %v225_v24 }
  0x2c   :  { %227 = vmatprep.subr.bf16.mxu0 %v302_v2 }
  0x2f   :  { %229 = vmatpush3.bf16.msra.mxu0 %v228_v27 }
  0x30   :  { %230 = vmatprep.subr.bf16.mxu0 %v302_v2 }
  0x33   :  { %232 = vmatpush3.bf16.msra.mxu0 %v231_v30 }
  0x94   :  { %v34_v34 = vpop.permute.xlu0 %33 }
  0x95   :  { %v44_v35 = vpop.permute.xlu1 %43  ;;  %v36_v37 = vsel %vm35_vm1, %v34_v34, 0 }
  0x99   :  { %v39_v38 = vpop.permute.xlu0 %38 }
  0x9a   :  { %v49_v40 = vpop.permute.xlu1 %48  ;;  %v41_v41 = vsel %vm40_vm2, %v39_v38, %v36_v37 }
  0x9b   :  { %v46_v42 = vsel %vm45_vm3, %v44_v35, %v41_v41 }
  0x9c   :  { %v51_v43 = vsel %vm50_vm4, %v49_v40, %v46_v42 }
  0x9d   :  { %v52_v44 = vshra.s32 %v51_v43, %v30_v39 }
  0x9f   :  { %v53_v45 = vand.u32 1, %v52_v44 }
  0xa1   :  { %v54_v46 = vcvt.s32.f32 %v53_v45 }
  0xa3   :  { %207 = vmatmul.mubr.f32.vlgmr.msra.gmra.mrb[0].mxu0 %v54_v46 }
 0x176   :  { %v137_v47 = vpop.f32.mrb[0].mxu0 }
 0x177   :  { %141 = vst [vmem:[#allocation5] sm:$0xff] %v137_v47  ;;  %v208_v48 = vpop.f32.mrb[1].mxu0 }
 0x178   :  { %282 = shalt.err (!%p279_p12)
}
 0x179   :  { %s283_s28 = scalar_lea.hbm %s352_s2, 128 }
 0x17a   :  { %p284_p13 = scmp.ne.s32.totalorder %s352_s2, %s283_s28  ;;  %p287_p0 = scmp.lt.u32.totalorder %s283_s28, %s352_s2 }
 0x17c   :  { %p289_p1 = pnand %p287_p0, %p284_p13 }
 0x17e   :  { %292 = shalt.err (!%p289_p1)
}
 0x17f   :  { %151 = dma.vmem_to_hbm [thread:$0]  %s149_s1, 128, %s352_s2, [#allocation4]  }
 0x180   :  { %295 = dma.done.wait [#allocation4], 128  }
 0x181   :  { %296 = vsyncadd [#allocation4], 4294967168 }
 0x182   :  { %155 = vsyncpa [#allocation3], 1 }
 0x183   :  { %156 = vsyncpa [#allocation4], 1 }

</bundles_post_ra>
